<compile_context>
chip_gen: v7x
topology: tpu7x:2x2x1
jax: 0.10.0
libtpu: 0.0.40
codegen_flags: <defaults>
</compile_context>

<pallas_src>
import jax
import jax.numpy as jnp
from jax.experimental import pallas as pl
from jax.experimental.pallas import tpu as pltpu

SUBLANE = 8  # sublane width (second-to-last dim granularity)


def mlp_kernel(x_ref, w1_ref, b1_ref, w2_ref, b2_ref, o_ref):
    # fc1: x @ W1^T + b1  (weights pre-transposed to [in, out] in prepare_params)
    h = jnp.dot(x_ref[...], w1_ref[...], preferred_element_type=jnp.float32)
    h = jnp.maximum(h + b1_ref[...], 0.0)  # bias broadcast + ReLU (VPU, free under DMA)
    # fc2: h @ W2^T + b2
    out = jnp.dot(h, w2_ref[...], preferred_element_type=jnp.float32)
    o_ref[...] = (out + b2_ref[...]).astype(o_ref.dtype)


def prepare_params(w1, b1, w2, b2):
    """One-time parameter prep (torch Linear layout [out, in] -> [in, out])."""
    return (
        jnp.asarray(w1).T,
        jnp.asarray(b1).reshape(1, -1),
        jnp.asarray(w2).T,
        jnp.asarray(b2).reshape(1, -1),
    )


def mlp_forward(x, w1_t, b1, w2_t, b2, *, block_b=4096, small_threshold=1024):
    """Inference forward of the PyTorch Model.

    x:    [B, D_in] float32
    w1_t: [D_in, D_h], b1: [1, D_h]      (pre-transposed, see prepare_params)
    w2_t: [D_h, D_out], b2: [1, D_out]
    Returns [B, D_out].
    """
    assert block_b % SUBLANE == 0, "block_b must be a multiple of 8"
    B, D_in = x.shape
    D_h = w1_t.shape[1]
    D_out = w2_t.shape[1]

    if B <= small_threshold:
        # Small case: no grid, no pipeline machinery. Whole arrays live in VMEM
        # as single blocks; the kernel is a handful of bundles. No padding at
        # all -- Mosaic pads the (B, 10) tiles inside vregs.
        return pl.pallas_call(
            mlp_kernel,
            out_shape=jax.ShapeDtypeStruct((B, D_out), x.dtype),
            in_specs=[pl.BlockSpec(memory_space=pltpu.MemorySpace.VMEM)] * 5,
            out_specs=pl.BlockSpec(memory_space=pltpu.MemorySpace.VMEM),
        )(x, w1_t, b1, w2_t, b2)

    # Large-batch path: tile only the batch axis; weights/biases use a constant
    # index_map so they stay resident in VMEM across grid steps (only x/out
    # stream from HBM). Batch axis marked "parallel" for megacore (v7x).
    Bp = pl.cdiv(B, SUBLANE) * SUBLANE
    num_blocks = pl.cdiv(Bp, block_b)
    if num_blocks > 1 and num_blocks % 2 == 1:
        num_blocks += 1  # even grid length so both v7x TensorCores get work
    # Shrink the per-block row count to the batch (bounded remainder waste).
    blk = pl.cdiv(pl.cdiv(Bp, num_blocks), SUBLANE) * SUBLANE
    Bp_t = num_blocks * blk

    x_p = jnp.pad(x, ((0, Bp_t - B), (0, 0))) if Bp_t != B else x

    out_p = pl.pallas_call(
        mlp_kernel,
        out_shape=jax.ShapeDtypeStruct((Bp_t, D_out), x.dtype),
        grid_spec=pltpu.PrefetchScalarGridSpec(
            num_scalar_prefetch=0,
            grid=(num_blocks,),
            in_specs=[
                pl.BlockSpec((blk, D_in), lambda i: (i, 0)),
                pl.BlockSpec((D_in, D_h), lambda i: (0, 0)),
                pl.BlockSpec((1, D_h), lambda i: (0, 0)),
                pl.BlockSpec((D_h, D_out), lambda i: (0, 0)),
                pl.BlockSpec((1, D_out), lambda i: (0, 0)),
            ],
            out_specs=pl.BlockSpec((blk, D_out), lambda i: (i, 0)),
        ),
        compiler_params=pltpu.CompilerParams(
            dimension_semantics=("parallel",)),
    )(x_p, w1_t, b1, w2_t, b2)
    return out_p[:B]


def _init_linear(key, in_f, out_f):
    """Deterministic init mimicking torch.nn.Linear default (uniform +-1/sqrt(in))."""
    kw, kb = jax.random.split(key)
    bound = 1.0 / jnp.sqrt(jnp.float32(in_f))
    w = jax.random.uniform(kw, (out_f, in_f), jnp.float32, -bound, bound)
    b = jax.random.uniform(kb, (out_f,), jnp.float32, -bound, bound)
    return w, b


if __name__ == "__main__":
    key = jax.random.PRNGKey(0)
    k_x, k_fc1, k_fc2 = jax.random.split(key, 3)

    B, D = 8, 10
    x = jax.random.normal(k_x, (B, D), jnp.float32)

    # Parameters in torch layout: W [out, in], b [out].
    w1, b1 = _init_linear(k_fc1, D, D)
    w2, b2 = _init_linear(k_fc2, D, D)

    # One-time parameter preparation (hoisted out of the per-call path).
    params = prepare_params(w1, b1, w2, b2)

    fwd = jax.jit(mlp_forward)
    out = fwd(x, *params)
    out = jax.block_until_ready(out)

    # Plain-JAX reference (same math as PyTorch eval-mode forward).
    ref = jnp.maximum(x @ w1.T + b1, 0.0) @ w2.T + b2
    assert out.shape == (B, D)
    assert jnp.allclose(out, ref, atol=1e-5, rtol=1e-5)

    print("KERNEL_OK")
</pallas_src>

<mosaic_0001>
module attributes {stable_mosaic.version = 11 : i64} {
  func.func @mlp_kernel(%arg0: memref<8x10xf32, #tpu.memory_space<vmem>>, %arg1: memref<10x10xf32, #tpu.memory_space<vmem>>, %arg2: memref<1x10xf32, #tpu.memory_space<vmem>>, %arg3: memref<10x10xf32, #tpu.memory_space<vmem>>, %arg4: memref<1x10xf32, #tpu.memory_space<vmem>>, %arg5: memref<8x10xf32, #tpu.memory_space<vmem>>) attributes {dimension_semantics = [], scalar_prefetch = 0 : i64, scratch_operands = 0 : i64, tpu.core_type = #tpu.core_type<tc>} {
    %c0 = arith.constant 0 : index
    %c0_0 = arith.constant 0 : index
    %0 = vector.load %arg0[%c0, %c0_0] : memref<8x10xf32, #tpu.memory_space<vmem>>, vector<8x10xf32>
    %c0_1 = arith.constant 0 : index
    %c0_2 = arith.constant 0 : index
    %1 = vector.load %arg1[%c0_1, %c0_2] : memref<10x10xf32, #tpu.memory_space<vmem>>, vector<10x10xf32>
    %cst = arith.constant dense<0.000000e+00> : vector<8x10xf32>
    %2 = tpu.matmul %0, %1, %cst {dimension_numbers = #tpu.dot_dimension_numbers<[1], [0], [0], [1], [0, 0, 1, 1], [], []>} : vector<8x10xf32>, vector<10x10xf32>, vector<8x10xf32> -> vector<8x10xf32>
    %c0_3 = arith.constant 0 : index
    %c0_4 = arith.constant 0 : index
    %3 = vector.load %arg2[%c0_3, %c0_4] : memref<1x10xf32, #tpu.memory_space<vmem>>, vector<1x10xf32>
    %4 = vector.broadcast %3 : vector<1x10xf32> to vector<8x10xf32>
    %5 = arith.addf %2, %4 : vector<8x10xf32>
    %cst_5 = arith.constant 0.000000e+00 : f32
    %6 = vector.broadcast %cst_5 : f32 to vector<8x10xf32>
    %7 = arith.maximumf %5, %6 : vector<8x10xf32>
    %c0_6 = arith.constant 0 : index
    %c0_7 = arith.constant 0 : index
    %8 = vector.load %arg3[%c0_6, %c0_7] : memref<10x10xf32, #tpu.memory_space<vmem>>, vector<10x10xf32>
    %cst_8 = arith.constant dense<0.000000e+00> : vector<8x10xf32>
    %9 = tpu.matmul %7, %8, %cst_8 {dimension_numbers = #tpu.dot_dimension_numbers<[1], [0], [0], [1], [0, 0, 1, 1], [], []>} : vector<8x10xf32>, vector<10x10xf32>, vector<8x10xf32> -> vector<8x10xf32>
    %c0_9 = arith.constant 0 : index
    %c0_10 = arith.constant 0 : index
    %10 = vector.load %arg4[%c0_9, %c0_10] : memref<1x10xf32, #tpu.memory_space<vmem>>, vector<1x10xf32>
    %11 = vector.broadcast %10 : vector<1x10xf32> to vector<8x10xf32>
    %12 = arith.addf %9, %11 : vector<8x10xf32>
    %c0_11 = arith.constant 0 : index
    %c0_12 = arith.constant 0 : index
    %13 = vector.load %arg5[%c0_11, %c0_12] : memref<8x10xf32, #tpu.memory_space<vmem>>, vector<8x10xf32>
    tpu.vector_store %arg5[%c0_11, %c0_12], %12 {strides = array<i32>} : memref<8x10xf32, #tpu.memory_space<vmem>>, vector<8x10xf32>,
    return
  }
}

</mosaic_0001>

<bundles_post_ra>
// kernel: mlp_forward.1
= control target key start
LH: loop header
LB: loop body
LE: loop exit
PB: predicated region body
PF: predicated region fallthrough
CT: control target
= control target key end

     0   :  { %10 = vsyncpa [#allocation3], 0  ;;  %s492_s0 = inlined_call_operand.hbm [shape: f32[8,10], index: 0, kind: input, shape index: {}]   ;;  %s493_s1 = inlined_call_operand.hbm [shape: f32[10,10], index: 1, kind: input, shape index: {}]   ;;  %s494_s2 = inlined_call_operand.vmem [shape: f32[1,10], index: 2, kind: input, shape index: {}]   ;;  %s495_s3 = inlined_call_operand.hbm [shape: f32[10,10], index: 3, kind: input, shape index: {}]   ;;  %s496_s4 = inlined_call_operand.vmem [shape: f32[1,10], index: 4, kind: input, shape index: {}]   ;;  %s497_s5 = inlined_call_operand.hbm [shape: f32[8,10], index: 5, kind: output, shape index: {}]  }
   0x1   :  { %11 = vsyncpa [#allocation6], 0 }
   0x2   :  { %12 = vsyncpa [#allocation4], 0  ;;  %s389_s18 = smov [#allocation5]   ;;  %s295_s22 = scalar_lea.hbm %s493_s1, 256 }
   0x3   :  { %s28_s19 = sshll.u32 %s389_s18, 4  ;;  %p296_p0 = scmp.ne.s32.totalorder %s493_s1, %s295_s22  ;;  %s29_s19 = int_to_ptr.vmem [resolvable:$true] %s28_s19 }
   0x4   :  { %p299_p1 = scmp.lt.u32.totalorder %s295_s22, %s493_s1 }
   0x6   :  { %p301_p2 = pnand %p299_p1, %p296_p0 }
   0x8   :  { %304 = shalt.err (!%p301_p2)
}
   0x9   :  { %s305_s27 = scalar_lea.vmem %s29_s19, 256  ;;  %p310_p4 = scmp.lt.s32.totalorder %s29_s19, %s29_s19 }
   0xa   :  { %p306_p3 = scmp.ne.s32.totalorder %s29_s19, %s305_s27  ;;  %p311_p5 = scmp.lt.s32.totalorder %s305_s27, %s305_s27 }
   0xc   :  { %p312_p6 = por %p311_p5, %p310_p4 }
   0xe   :  { %p313_p7 = pnand %p312_p6, %p306_p3 }
  0x10   :  { %316 = shalt.err (!%p313_p7)
}
  0x11   :  { %s390_s28 = smov 128   ;;  %s391_s29 = smov 8  }
  0x12   :  { %34 = dma.hbm_to_vmem [thread:$0]  %s493_s1, 256, %s29_s19, [#allocation6], %s390_s28, %s390_s28, %s391_s29  }
  0x13   :  { %s392_s7 = smov [#allocation2]   ;;  %s393_s9 = smov [#allocation7]  }
  0x14   :  { %s19_s8 = sshll.u32 %s392_s7, 4  ;;  %s42_s10 = sshll.u32 %s393_s9, 4  ;;  %s20_s8 = int_to_ptr.vmem [resolvable:$true] %s19_s8  ;;  %s43_s10 = int_to_ptr.vmem [resolvable:$true] %s42_s10 }
  0x15   :  { %s317_s13 = scalar_lea.hbm %s492_s0, 128 }
  0x16   :  { %p318_p8 = scmp.ne.s32.totalorder %s492_s0, %s317_s13  ;;  %p321_p9 = scmp.lt.u32.totalorder %s317_s13, %s492_s0 }
  0x18   :  { %p323_p10 = pnand %p321_p9, %p318_p8 }
  0x1a   :  { %326 = shalt.err (!%p323_p10)
}
  0x1b   :  { %s327_s1 = scalar_lea.vmem %s20_s8, 128  ;;  %p332_p12 = scmp.lt.s32.totalorder %s20_s8, %s20_s8 }
  0x1c   :  { %p328_p11 = scmp.ne.s32.totalorder %s20_s8, %s327_s1  ;;  %p333_p13 = scmp.lt.s32.totalorder %s327_s1, %s327_s1 }
  0x1e   :  { %p334_p0 = por %p333_p13, %p332_p12 }
  0x20   :  { %p335_p1 = pnand %p334_p0, %p328_p11 }
  0x22   :  { %338 = shalt.err (!%p335_p1)
}
  0x23   :  { %22 = dma.hbm_to_vmem [thread:$0]  %s492_s0, 128, %s20_s8, [#allocation3]  }
  0x24   :  { %s339_s22 = scalar_lea.hbm %s495_s3, 256 }
  0x25   :  { %p340_p2 = scmp.ne.s32.totalorder %s495_s3, %s339_s22  ;;  %p343_p3 = scmp.lt.u32.totalorder %s339_s22, %s495_s3 }
  0x27   :  { %p345_p4 = pnand %p343_p3, %p340_p2 }
  0x29   :  { %348 = shalt.err (!%p345_p4)
}
  0x2a   :  { %s349_s27 = scalar_lea.vmem %s43_s10, 256  ;;  %p354_p6 = scmp.lt.s32.totalorder %s43_s10, %s43_s10 }
  0x2b   :  { %p350_p5 = scmp.ne.s32.totalorder %s43_s10, %s349_s27  ;;  %p355_p7 = scmp.lt.s32.totalorder %s349_s27, %s349_s27 }
  0x2d   :  { %p356_p8 = por %p355_p7, %p354_p6 }
  0x2f   :  { %p357_p9 = pnand %p356_p8, %p350_p5 }
  0x31   :  { %360 = shalt.err (!%p357_p9)
}
  0x32   :  { %48 = dma.hbm_to_vmem [thread:$0]  %s495_s3, 256, %s43_s10, [#allocation6], %s390_s28, %s390_s28, %s391_s29  }
  0x33   :  { %383 = dma.done.wait [#allocation3], 128  }
  0x34   :  { %384 = vsyncadd [#allocation3], 4294967168 }
  0x35   :  { %385 = dma.done.wait [#allocation6], 512  }
  0x36   :  { %386 = vsyncadd [#allocation6], 4294966784  ;;  %v394_v0 = vmov 0.0|0.0   ;;  %vm395_vm0 = vmmov 0   ;;  %v396_v1 = vmov 0.0   ;;  %vm74_vm1 = vcmask 1041408  }
  0x37   :  { %277 = vmatprep.subr.bf16.mxu0 %v394_v0  ;;  %281 = vmatprep.subr.bf16.mxu1 %v394_v0  ;;  %v61_v2 = vld [vmem:[#allocation5] sm:$0xff]  ;;  %v62_v3 = vld [vmem:[#allocation5 + $0x8] sm:$0x3]  ;;  %vm397_vm2 = vmmov 1   ;;  %v60_v5 = vld [vmem:[#allocation2] sm:$0xff]  ;;  %vm70_vm4 = vcmask 80896  }
  0x38   :  { %267 = vmatprep.mubr.msk.f32.mxu0 %vm395_vm0, %v396_v1  ;;  %274 = vmatprep.mubr.msk.f32.mxu1 %vm395_vm0, %v396_v1  ;;  %vm279_vm3 = vmpackc.low %vm74_vm1, %vm397_vm2  ;;  %v278_v4 = vpack.c.bf16 %v62_v3, %v61_v2  ;;  %v149_v6 = vld [vmem:[#allocation7] sm:$0xff]  ;;  %v150_v7 = vld [vmem:[#allocation7 + $0x8] sm:$0x3]  ;;  %s398_s7 = smov [#allocation8]  }
  0x39   :  { %v282_v8 = vpack.c.bf16 %v150_v7, %v149_v6  ;;  %v251_v9 = vld [vmem:[%s494_s2] ss:$0 sm:$0xff]  ;;  %s241_s8 = sshll.u32 %s398_s7, 4  ;;  %s242_s8 = int_to_ptr.vmem [resolvable:$true] %s241_s8 }
  0x3a   :  { %280 = vmatpush3.bf16.msk.msra.mxu0 %vm279_vm3, %v278_v4  ;;  %v254_v14 = vld [vmem:[%s496_s4] ss:$0 sm:$0xff]  ;;  %s361_s9 = scalar_lea.vmem %s242_s8, 128  ;;  %p366_p11 = scmp.lt.s32.totalorder %s242_s8, %s242_s8 }
  0x3b   :  { %284 = vmatpush3.bf16.msk.msra.mxu1 %vm279_vm3, %v282_v8  ;;  %p362_p10 = scmp.ne.s32.totalorder %s242_s8, %s361_s9  ;;  %p367_p12 = scmp.lt.s32.totalorder %s361_s9, %s361_s9 }
  0x3d   :  { %268 = vmatmul.mubr.msk.f32.vlgmr.msra.gmra.mrb[0].mxu0 %vm70_vm4, %v60_v5  ;;  %p368_p13 = por %p367_p12, %p366_p11 }
  0x3f   :  { %p369_p0 = pnand %p368_p13, %p362_p10 }
 0x110   :  { %v144_v10 = vpop.f32.mrb[0].mxu0 }
 0x111   :  { %v145_v11 = vadd.f32 %v251_v9, %v144_v10  ;;  %v269_v12 = vpop.f32.mrb[1].mxu0 }
 0x113   :  { %v148_v13 = vmax.f32 %v145_v11, 0.0 }
 0x115   :  { %275 = vmatmul.mubr.msk.f32.vlgmr.msra.gmra.mrb[0].mxu1 %vm70_vm4, %v148_v13 }
 0x1e8   :  { %v230_v15 = vpop.f32.mrb[0].mxu1 }
 0x1e9   :  { %v231_v16 = vadd.f32 %v254_v14, %v230_v15  ;;  %v276_v17 = vpop.f32.mrb[1].mxu1 }
 0x1eb   :  { %234 = vst.msk [vmem:[#allocation8] sm:$0xff] %vm70_vm4, %v231_v16 }
 0x1ec   :  { %372 = shalt.err (!%p369_p0)
}
 0x1ed   :  { %s373_s11 = scalar_lea.hbm %s497_s5, 128 }
 0x1ee   :  { %p374_p1 = scmp.ne.s32.totalorder %s497_s5, %s373_s11  ;;  %p377_p2 = scmp.lt.u32.totalorder %s373_s11, %s497_s5 }
 0x1f0   :  { %p379_p3 = pnand %p377_p2, %p374_p1 }
 0x1f2   :  { %382 = shalt.err (!%p379_p3)
}
 0x1f3   :  { %244 = dma.vmem_to_hbm [thread:$0]  %s242_s8, 128, %s497_s5, [#allocation4]  }
 0x1f4   :  { %387 = dma.done.wait [#allocation4], 128  }
 0x1f5   :  { %388 = vsyncadd [#allocation4], 4294967168 }
 0x1f6   :  { %248 = vsyncpa [#allocation3], 1 }
 0x1f7   :  { %249 = vsyncpa [#allocation6], 1 }
 0x1f8   :  { %250 = vsyncpa [#allocation4], 1 }

</bundles_post_ra>
